<compile_context>
chip_gen: v7x
topology: tpu7x:2x2x1
jax: 0.10.0
libtpu: 0.0.40
codegen_flags: <defaults>
</compile_context>

<pallas_src>
import jax
import jax.numpy as jnp
from jax.experimental import pallas as pl
from jax.experimental.pallas import tpu as pltpu
import numpy as np


def _downmix_kernel(x_ref, o_ref):
    """One grid step == one time-tile.

    x_ref : VMEM (C, blk) tile of the input
    o_ref : VMEM (1, blk) tile of the output
    """
    x = x_ref[...].astype(jnp.float32)                  # accumulate in f32
    inv_c = jnp.float32(1.0 / x.shape[0])
    mono = jnp.sum(x, axis=0, keepdims=True) * inv_c    # (1, blk)
    o_ref[...] = mono.astype(o_ref.dtype)


def downmix_mono(waveform, *, block_lanes=None, vmem_budget_bytes=8 * 1024 * 1024):
    """Pallas port of DownmixMono.forward: mean over dim 0, keepdim=True.

    block_lanes      : optional cap on the lane (time) tile width (testing / tuning).
    vmem_budget_bytes: single-buffer VMEM budget used to auto-size the tile
                       (double-buffering roughly doubles the real footprint).
    """
    x = jnp.asarray(waveform)
    orig_shape = x.shape
    C = int(orig_shape[0])

    # Flatten everything after dim 0 onto the lane axis.
    x2 = x.reshape(C, -1) if x.ndim > 1 else x.reshape(C, 1)
    T = x2.shape[1]

    # --- auto tile sizing ----------------------------------------------------
    # Per lane column, the input tile occupies round_up(C, sub) sublanes and the
    # output tile one (padded) sublane group, where `sub` is the sublane packing
    # granularity for this dtype (8 for f32, 16 for bf16, ...).
    itemsize = x2.dtype.itemsize
    sub = max(8, 32 // itemsize)
    pad_c = -(-C // sub) * sub
    bytes_per_lane = (pad_c + sub) * itemsize
    max_blk = max(128, vmem_budget_bytes // bytes_per_lane)
    if block_lanes is not None:
        max_blk = min(max_blk, int(block_lanes))

    if T <= max_blk:
        # Single full-extent block: legal for any T (no 128-multiple requirement).
        blk = T
    else:
        # Lane-dense 128-multiple tiles; partial last block is boundary-masked
        # by Pallas (safe: computation is independent per lane column).
        blk = max(128, (max_blk // 128) * 128)

    grid = (pl.cdiv(T, blk),)

    out2 = pl.pallas_call(
        _downmix_kernel,
        out_shape=jax.ShapeDtypeStruct((1, T), x2.dtype),
        grid_spec=pl.GridSpec(
            grid=grid,
            in_specs=[pl.BlockSpec((C, blk), lambda i: (0, i))],
            out_specs=pl.BlockSpec((1, blk), lambda i: (0, i)),
        ),
        compiler_params=pltpu.CompilerParams(
            dimension_semantics=("parallel",)
        ),
    )(x2)

    return out2.reshape((1,) + orig_shape[1:])


class DownmixMonoPallas:
    """Pallas/JAX port of the PyTorch DownmixMono module (no parameters)."""

    def __call__(self, waveform):
        return downmix_mono(waveform)


def _numpy_reference(x):
    xf = np.asarray(x, dtype=np.float32)
    return xf.mean(axis=0, keepdims=True)


if __name__ == "__main__":
    key = jax.random.PRNGKey(0)
    module = DownmixMonoPallas()

    k1, k2, k3 = jax.random.split(key, 3)

    # Main case: multi-channel waveform (channels, samples), single tile.
    wav = jax.random.normal(k1, (4, 1024), dtype=jnp.float32)
    out = jax.block_until_ready(module(wav))
    assert out.shape == (1, 1024) and out.dtype == wav.dtype
    np.testing.assert_allclose(np.array(out), _numpy_reference(wav),
                               rtol=1e-6, atol=1e-6)

    # Multi-tile path: force a small lane tile to exercise the grid loop.
    wav_big = jax.random.normal(k2, (2, 2048), dtype=jnp.float32)
    out_big = jax.block_until_ready(downmix_mono(wav_big, block_lanes=512))
    assert out_big.shape == (1, 2048)
    np.testing.assert_allclose(np.array(out_big), _numpy_reference(wav_big),
                               rtol=1e-6, atol=1e-6)

    # Non-128-multiple T, multi-tile with a partial (boundary-masked) last block.
    wav_odd = jax.random.normal(k3, (2, 1000), dtype=jnp.float32)
    out_odd = jax.block_until_ready(downmix_mono(wav_odd, block_lanes=384))
    assert out_odd.shape == (1, 1000)
    np.testing.assert_allclose(np.array(out_odd), _numpy_reference(wav_odd),
                               rtol=1e-6, atol=1e-6)

    # Non-128-multiple T on the auto (single full-extent block) path.
    out_odd_auto = jax.block_until_ready(module(wav_odd))
    np.testing.assert_allclose(np.array(out_odd_auto), _numpy_reference(wav_odd),
                               rtol=1e-6, atol=1e-6)

    # bf16 input: mean accumulated in float32, result cast back to bf16.
    wav_bf16 = wav.astype(jnp.bfloat16)
    out_bf16 = jax.block_until_ready(module(wav_bf16))
    assert out_bf16.dtype == jnp.bfloat16 and out_bf16.shape == (1, 1024)
    ref_bf16 = _numpy_reference(np.array(wav_bf16, dtype=np.float32))
    np.testing.assert_allclose(np.array(out_bf16, dtype=np.float32), ref_bf16,
                               rtol=1e-2, atol=1e-2)

    print("KERNEL_OK")
</pallas_src>

<mosaic_0001>
module attributes {stable_mosaic.version = 11 : i64} {
  func.func @_downmix_kernel(%arg0: i32, %arg1: memref<4x1024xf32, #tpu.memory_space<vmem>>, %arg2: memref<1x1024xf32, #tpu.memory_space<vmem>>) attributes {dimension_semantics = [#tpu.dimension_semantics<parallel>], iteration_bounds = array<i64: 1>, scalar_prefetch = 0 : i64, scratch_operands = 0 : i64, tpu.core_type = #tpu.core_type<tc>, window_params = [{transform_indices = @transform_0, window_bounds = array<i64: 4, 1024>}, {transform_indices = @transform_1, window_bounds = array<i64: 1, 1024>}]} {
    %c0 = arith.constant 0 : index
    %c0_0 = arith.constant 0 : index
    %0 = vector.load %arg1[%c0, %c0_0] : memref<4x1024xf32, #tpu.memory_space<vmem>>, vector<4x1024xf32>
    %cst = arith.constant dense<0.000000e+00> : vector<1024xf32>
    %1 = vector.multi_reduction <add>, %0, %cst [0] : vector<4x1024xf32> to vector<1024xf32>
    %2 = vector.shape_cast %1 : vector<1024xf32> to vector<1x1024xf32>
    %cst_1 = arith.constant 2.500000e-01 : f32
    %3 = vector.broadcast %cst_1 : f32 to vector<1x1024xf32>
    %4 = arith.mulf %2, %3 : vector<1x1024xf32>
    %c0_2 = arith.constant 0 : index
    %c0_3 = arith.constant 0 : index
    %5 = vector.load %arg2[%c0_2, %c0_3] : memref<1x1024xf32, #tpu.memory_space<vmem>>, vector<1x1024xf32>
    tpu.vector_store %arg2[%c0_2, %c0_3], %4 {strides = array<i32>} : memref<1x1024xf32, #tpu.memory_space<vmem>>, vector<1x1024xf32>,
    return
  }
  func.func @transform_0(%arg0: i32) -> (i32, i32) {
    %c0_i32 = arith.constant 0 : i32
    %c0_i32_0 = arith.constant 0 : i32
    return %c0_i32, %arg0 : i32, i32
  }
  func.func @transform_1(%arg0: i32) -> (i32, i32) {
    %c0_i32 = arith.constant 0 : i32
    %c0_i32_0 = arith.constant 0 : i32
    return %c0_i32, %arg0 : i32, i32
  }
}

</mosaic_0001>

<bundles_post_ra>
// kernel: tpu_custom_call.1
= control target key start
LH: loop header
LB: loop body
LE: loop exit
PB: predicated region body
PF: predicated region fallthrough
CT: control target
= control target key end

     0   :  { %6 = vsyncpa [#allocation3], 0  ;;  %s284_s0 = inlined_call_operand.hbm [shape: f32[4,1024], index: 0, kind: input, shape index: {}]   ;;  %s285_s1 = inlined_call_operand.hbm [shape: f32[1,1024], index: 1, kind: output, shape index: {}]  }
   0x1   :  { %7 = vsyncpa [#allocation4], 0  ;;  %s231_s6 = smov [#allocation2]   ;;  %s183_s10 = scalar_lea.hbm %s284_s0, 512 }
   0x2   :  { %s14_s7 = sshll.u32 %s231_s6, 4  ;;  %p184_p0 = scmp.ne.s32.totalorder %s284_s0, %s183_s10  ;;  %s15_s7 = int_to_ptr.vmem [resolvable:$true] %s14_s7 }
   0x3   :  { %p187_p1 = scmp.lt.u32.totalorder %s183_s10, %s284_s0 }
   0x5   :  { %p189_p2 = pnand %p187_p1, %p184_p0 }
   0x7   :  { %192 = shalt.err (!%p189_p2)
}
   0x8   :  { %s193_s15 = scalar_lea.vmem %s15_s7, 512  ;;  %p198_p4 = scmp.lt.s32.totalorder %s15_s7, %s15_s7 }
   0x9   :  { %p194_p3 = scmp.ne.s32.totalorder %s15_s7, %s193_s15  ;;  %p199_p5 = scmp.lt.s32.totalorder %s193_s15, %s193_s15 }
   0xb   :  { %p200_p6 = por %p199_p5, %p198_p4 }
   0xd   :  { %p201_p7 = pnand %p200_p6, %p194_p3 }
   0xf   :  { %204 = shalt.err (!%p201_p7)
}
  0x10   :  { %17 = dma.hbm_to_vmem [thread:$0]  %s284_s0, 512, %s15_s7, [#allocation3]  }
  0x11   :  { %227 = dma.done.wait [#allocation3], 512  }
  0x12   :  { %228 = vsyncadd [#allocation3], 4294966784  ;;  %v232_v0 = vmov 1966171168   ;;  %v117_v2 = vlaneseq  ;;  %vm37_vm0 = vcmask 1043456   ;;  %v21_v3 = vld [vmem:[#allocation2] sm:$0xff] }
  0x13   :  { %v256_v1 = vunpack.c.l.s4 %v232_v0  ;;  %v22_v4 = vld [vmem:[#allocation2 + $0x8] sm:$0xff]  ;;  %v23_v5 = vld [vmem:[#allocation2 + $0x10] sm:$0xff]  ;;  %v24_v8 = vld [vmem:[#allocation2 + $0x18] sm:$0xff]  ;;  %v29_v9 = vcombine.high %v21_v3, %v21_v3  ;;  %v38_v12 = vsel %vm37_vm0, %v21_v3, 0.0  ;;  %s233_s0 = smov [#allocation5]  }
  0x14   :  { %v259_v7 = vshrl.u32 %v117_v2, 7  ;;  %v30_v10 = vcombine.high %v22_v4, %v22_v4  ;;  %v31_v11 = vcombine.high %v23_v5, %v23_v5  ;;  %v32_v13 = vcombine.high %v24_v8, %v24_v8  ;;  %s167_s18 = sshll.u32 %s233_s0, 4  ;;  %s168_s18 = int_to_ptr.vmem [resolvable:$true] %s167_s18 }
  0x15   :  { %v116_v6 = vunpack.c.0.s8 %v256_v1  ;;  %v39_v14 = vrot.slane %v38_v12, 4  ;;  %v52_v15 = vsel %vm37_vm0, %v22_v4, 0.0  ;;  %v66_v16 = vsel %vm37_vm0, %v23_v5, 0.0  ;;  %s205_s19 = scalar_lea.vmem %s168_s18, 128  ;;  %p210_p9 = scmp.lt.s32.totalorder %s168_s18, %s168_s18 }
  0x16   :  { %v45_v17 = vsel %vm37_vm0, %v29_v9, 0.0  ;;  %v53_v18 = vrot.slane %v52_v15, 4  ;;  %v59_v19 = vsel %vm37_vm0, %v30_v10, 0.0  ;;  %v67_v20 = vrot.slane %v66_v16, 4  ;;  %p206_p8 = scmp.ne.s32.totalorder %s168_s18, %s205_s19  ;;  %p211_p10 = scmp.lt.s32.totalorder %s205_s19, %s205_s19 }
  0x17   :  { %v40_v21 = vadd.f32 %v39_v14, %v38_v12  ;;  %v46_v22 = vrot.slane %v45_v17, 4  ;;  %v60_v23 = vrot.slane %v59_v19, 4  ;;  %v73_v24 = vsel %vm37_vm0, %v31_v11, 0.0 }
  0x18   :  { %v54_v25 = vadd.f32 %v53_v18, %v52_v15  ;;  %v68_v26 = vadd.f32 %v67_v20, %v66_v16  ;;  %v74_v27 = vrot.slane %v73_v24, 4  ;;  %v80_v28 = vsel %vm37_vm0, %v24_v8, 0.0  ;;  %p212_p11 = por %p211_p10, %p210_p9 }
  0x19   :  { %v41_v29 = vrot.slane %v40_v21, 2  ;;  %v47_v30 = vadd.f32 %v46_v22, %v45_v17  ;;  %v61_v31 = vadd.f32 %v60_v23, %v59_v19  ;;  %v81_v32 = vrot.slane %v80_v28, 4 }
  0x1a   :  { %v55_v33 = vrot.slane %v54_v25, 2  ;;  %v69_v34 = vrot.slane %v68_v26, 2  ;;  %v75_v35 = vadd.f32 %v74_v27, %v73_v24  ;;  %v87_v36 = vsel %vm37_vm0, %v32_v13, 0.0  ;;  %p213_p12 = pnand %p212_p11, %p206_p8 }
  0x1b   :  { %v42_v37 = vadd.f32 %v41_v29, %v40_v21  ;;  %v48_v38 = vrot.slane %v47_v30, 2  ;;  %v62_v39 = vrot.slane %v61_v31, 2  ;;  %v82_v40 = vadd.f32 %v81_v32, %v80_v28 }
  0x1c   :  { %v56_v41 = vadd.f32 %v55_v33, %v54_v25  ;;  %v70_v42 = vadd.f32 %v69_v34, %v68_v26  ;;  %v76_v43 = vrot.slane %v75_v35, 2  ;;  %v88_v44 = vrot.slane %v87_v36, 4 }
  0x1d   :  { %v43_v45 = vrot.slane %v42_v37, 1  ;;  %v49_v46 = vadd.f32 %v48_v38, %v47_v30  ;;  %v63_v47 = vadd.f32 %v62_v39, %v61_v31  ;;  %v83_v48 = vrot.slane %v82_v40, 2 }
  0x1e   :  { %v57_v49 = vrot.slane %v56_v41, 1  ;;  %v71_v50 = vrot.slane %v70_v42, 1  ;;  %v77_v51 = vadd.f32 %v76_v43, %v75_v35  ;;  %v89_v52 = vadd.f32 %v88_v44, %v87_v36 }
  0x1f   :  { %v44_v53 = vadd.f32 %v43_v45, %v42_v37  ;;  %v50_v54 = vrot.slane %v49_v46, 1  ;;  %v64_v55 = vrot.slane %v63_v47, 1  ;;  %v84_v56 = vadd.f32 %v83_v48, %v82_v40 }
  0x20   :  { %v58_v57 = vadd.f32 %v57_v49, %v56_v41  ;;  %v72_v58 = vadd.f32 %v71_v50, %v70_v42  ;;  %v78_v59 = vrot.slane %v77_v51, 1  ;;  %v90_v60 = vrot.slane %v89_v52, 2 }
  0x21   :  { %v51_v61 = vadd.f32 %v50_v54, %v49_v46  ;;  %v65_v62 = vadd.f32 %v64_v55, %v63_v47  ;;  %v85_v63 = vrot.slane %v84_v56, 1  ;;  %v94_v0 = vmul.f32 0.25, %v44_v53 }
  0x22   :  { %v79_v2 = vadd.f32 %v78_v59, %v77_v51  ;;  %v91_v3 = vadd.f32 %v90_v60, %v89_v52  ;;  %v96_v4 = vmul.f32 0.25, %v58_v57  ;;  %v98_v5 = vmul.f32 0.25, %v72_v58 }
  0x23   :  { %v86_v8 = vadd.f32 %v85_v63, %v84_v56  ;;  %v95_v9 = vmul.f32 0.25, %v51_v61  ;;  %v97_v10 = vmul.f32 0.25, %v65_v62  ;;  %v119_v11 = vsub.s32 %v116_v6, %v259_v7 }
  0x24   :  { %v92_v12 = vrot.slane %v91_v3, 1  ;;  %v99_v13 = vmul.f32 0.25, %v79_v2 }
  0x25   :  { %v110_v14 = vcombine.low %v94_v0, %v95_v9  ;;  %v111_v15 = vcombine.low %v96_v4, %v97_v10  ;;  %v100_v17 = vmul.f32 0.25, %v86_v8 }
  0x26   :  { %v93_v16 = vadd.f32 %v92_v12, %v91_v3  ;;  %v112_v18 = vcombine.low %v98_v5, %v99_v13 }
  0x27   :  { %v120_v19 = vrot.slane %v110_v14, %v119_v11  ;;  %v127_v20 = vrot.slane %v111_v15, %v119_v11 }
  0x28   :  { %v101_v21 = vmul.f32 0.25, %v93_v16  ;;  %v134_v23 = vrot.slane %v112_v18, %v119_v11 }
  0x29   :  { %v142_v24 = vcombine.low %v120_v19, %v127_v20 }
  0x2a   :  { %v113_v22 = vcombine.low %v100_v17, %v101_v21 }
  0x2b   :  { %v150_v27 = vrot.slane %v142_v24, %v119_v11 }
  0x2c   :  { %v141_v25 = vrot.slane %v113_v22, %v119_v11 }
  0x2e   :  { %v143_v26 = vcombine.low %v134_v23, %v141_v25 }
  0x30   :  { %v157_v1 = vrot.slane %v143_v26, %v119_v11 }
  0x32   :  { %v158_v6 = vcombine.low %v150_v27, %v157_v1 }
  0x34   :  { %160 = vst [vmem:[#allocation5] sm:$0xff] %v158_v6 }
  0x35   :  { %216 = shalt.err (!%p213_p12)
}
  0x36   :  { %s217_s22 = scalar_lea.hbm %s285_s1, 128 }
  0x37   :  { %p218_p13 = scmp.ne.s32.totalorder %s285_s1, %s217_s22  ;;  %p221_p0 = scmp.lt.u32.totalorder %s217_s22, %s285_s1 }
  0x39   :  { %p223_p1 = pnand %p221_p0, %p218_p13 }
  0x3b   :  { %226 = shalt.err (!%p223_p1)
}
  0x3c   :  { %170 = dma.vmem_to_hbm [thread:$0]  %s168_s18, 128, %s285_s1, [#allocation4]  }
  0x3d   :  { %229 = dma.done.wait [#allocation4], 128  }
  0x3e   :  { %230 = vsyncadd [#allocation4], 4294967168 }
  0x3f   :  { %174 = vsyncpa [#allocation3], 1 }
  0x40   :  { %175 = vsyncpa [#allocation4], 1 }

</bundles_post_ra>
